<compile_context>
chip_gen: v6e
topology: v6e:2x2x1
jax: 0.10.0
libtpu: 0.0.40
codegen_flags: <defaults>
</compile_context>

<pallas_src>
import math

import jax
import jax.numpy as jnp
from jax.experimental import pallas as pl
from jax.experimental.pallas import tpu as pltpu


def _round_up(x: int, m: int) -> int:
    return ((x + m - 1) // m) * m


def _cdiv(a: int, b: int) -> int:
    return -(-a // b)


def _vmem_capacity_bytes() -> int:
    try:
        return int(pltpu.get_tpu_info().vmem_capacity_bytes)
    except Exception:
        return 64 << 20  # conservative fallback (v7x per-core VMEM); v5e/v6e have 128 MiB


_SQRT_2_OVER_PI = 0.7978845608028654


def _gelu_tanh(h):
    # tanh-approximate GeLU, f32 math: tanh -> EUP, polynomial -> VPU (h*h*h avoids pow).
    c = jnp.float32(_SQRT_2_OVER_PI)
    return 0.5 * h * (1.0 + jnp.tanh(c * (h + 0.044715 * (h * h * h))))


# ----------------------------------------------------------------------------- kernels
def _ffn_kernel_resident(x_ref, w1_ref, b1_ref, w2_ref, b2_ref, o_ref):
    # Weights fully resident in VMEM (fetched once); 1-D grid over row tiles.
    x = x_ref[...].astype(w1_ref.dtype)                       # in-kernel cast for the MXU
    h = jnp.dot(x, w1_ref[...], preferred_element_type=jnp.float32) + b1_ref[...]
    g = _gelu_tanh(h)
    out = jnp.dot(g.astype(w2_ref.dtype), w2_ref[...],
                  preferred_element_type=jnp.float32) + b2_ref[...]
    o_ref[...] = out.astype(o_ref.dtype)


def _ffn_kernel_streamed(x_ref, w1_ref, b1_ref, w2_ref, b2_ref, o_ref, acc_ref):
    # Hidden dim streamed along grid axis 1 ("arbitrary"); f32 accumulator in VMEM scratch.
    h_idx = pl.program_id(1)

    @pl.when(h_idx == 0)
    def _():
        # Fold b2 into the accumulator init so the epilogue is just a cast.
        acc_ref[...] = jnp.broadcast_to(b2_ref[...].astype(jnp.float32), acc_ref.shape)

    x = x_ref[...].astype(w1_ref.dtype)
    h = jnp.dot(x, w1_ref[...], preferred_element_type=jnp.float32) + b1_ref[...]
    g = _gelu_tanh(h)
    acc_ref[...] += jnp.dot(g.astype(w2_ref.dtype), w2_ref[...],
                            preferred_element_type=jnp.float32)

    @pl.when(h_idx == pl.num_programs(1) - 1)
    def _():
        o_ref[...] = acc_ref[...].astype(o_ref.dtype)


# ----------------------------------------------------------------------------- wrappers
def prepare_ffn_weights(w1, b1, w2, b2, *, compute_dtype=jnp.bfloat16):
    """Pad to lane-dense multiples of 128 and cast weights to the MXU compute dtype.

    Call ONCE at model init and pass the result to feed_forward(); this removes the
    per-call HBM pad/cast pass over the weight matrices.
    """
    E, H = w1.shape
    assert w2.shape == (H, E) and b1.shape == (H,) and b2.shape == (E,)
    Ep, Hp = _round_up(E, 128), _round_up(H, 128)
    cd = jnp.dtype(compute_dtype)
    return {
        "w1": jnp.pad(w1, ((0, Ep - E), (0, Hp - H))).astype(cd),
        "b1": jnp.pad(b1, (0, Hp - H)).reshape(1, Hp).astype(jnp.float32),
        "w2": jnp.pad(w2, ((0, Hp - H), (0, Ep - E))).astype(cd),
        "b2": jnp.pad(b2, (0, Ep - E)).reshape(1, Ep).astype(jnp.float32),
        "E": E,
        "H": H,
    }


def feed_forward(x, params, *, tm=512, _force_streamed=False, _max_th=None):
    """x: (batch, seq, E) -> (batch, seq, E). `params` from prepare_ffn_weights()."""
    w1p, b1p, w2p, b2p = params["w1"], params["b1"], params["w2"], params["b2"]
    E, H = params["E"], params["H"]
    B, S, E_in = x.shape
    assert E_in == E, f"x emb dim {E_in} != weight emb dim {E}"
    Ep, Hp = w1p.shape
    M = B * S

    cd_bytes = jnp.dtype(w1p.dtype).itemsize
    x_bytes = jnp.dtype(x.dtype).itemsize
    out_bytes = x_bytes                                   # output in the input dtype

    vmem_cap = _vmem_capacity_bytes()
    budget = int(vmem_cap * 0.75)                          # headroom for Mosaic internals

    # ---- row tile ------------------------------------------------------------------
    tm_eff = min(tm, _round_up(M, 8))
    # v7x has 2 TensorCores: give the "parallel" row axis >= 2 tiles when M allows
    # (no-op on 1-TC v5e/v6e; only triggers in the narrow 256 < M < 2*tm band).
    if M > 256 and _cdiv(M, tm_eff) < 2:
        tm_eff = max(256, _round_up(_cdiv(M, 2), 256))
    tm_candidates = [t for t in dict.fromkeys((tm_eff, 512, 256, 128, 64)) if t <= tm_eff]

    # (tm, th) GeLU temporaries: f32 h, f32 g, bf16 cast of g.
    def _interm(tm_, h_):
        return tm_ * h_ * (4 + 4 + cd_bytes)

    # Fast path working set: whole padded weights resident in VMEM (single fetch).
    def resident_ws(tm_):
        return (2 * 2 * Ep * Hp * cd_bytes                 # W1 + W2 (double buffers counted)
                + 2 * (Hp + Ep) * 4                        # b1 + b2 (f32)
                + 2 * tm_ * Ep * (x_bytes + out_bytes)     # x / out tiles, double-buffered
                + _interm(tm_, Hp))

    # Streamed path working set: th-wide W1/W2 blocks + f32 accumulator scratch.
    def streamed_ws(tm_, th_):
        return (2 * tm_ * Ep * x_bytes
                + 2 * Ep * th_ * cd_bytes
                + 2 * th_ * 4
                + 2 * th_ * Ep * cd_bytes
                + 2 * Ep * 4
                + 2 * tm_ * Ep * out_bytes
                + tm_ * Ep * 4                             # accumulator scratch
                + _interm(tm_, th_))

    resident_tm = None
    if not _force_streamed:
        for tm_try in tm_candidates:
            if resident_ws(tm_try) <= budget:
                resident_tm = tm_try
                break

    if resident_tm is not None:
        tm_eff, th = resident_tm, Hp
        ws = resident_ws(tm_eff)
    else:
        th_candidates = [c for c in (2048, 1024, 512, 256, 128)
                         if Hp % c == 0 and (_max_th is None or c <= _max_th)]
        if not th_candidates:
            th_candidates = [128]
        tile = None
        for tm_try in tm_candidates:                       # largest tm first (roofline lever)
            for th_try in th_candidates:                   # then largest th that fits
                if streamed_ws(tm_try, th_try) <= budget:
                    tile = (tm_try, th_try)
                    break
            if tile is not None:
                break
        if tile is None:                                   # last resort: smallest tiles
            tile = (tm_candidates[-1], th_candidates[-1])
        tm_eff, th = tile
        ws = streamed_ws(tm_eff, th)

    Mp = _round_up(M, tm_eff)
    n_row_tiles = Mp // tm_eff

    # Lane-dense zero padding of the activations only (weights pre-padded at init).
    x2d = jnp.pad(x.reshape(M, E), ((0, Mp - M), (0, Ep - E)))

    # Generation-aware scoped-VMEM limit (never request beyond physical capacity).
    vmem_limit = min(int(ws * 1.25) + (4 << 20), int(vmem_cap * 0.9))

    weight_fetches = 1 if resident_tm is not None else n_row_tiles
    cost = pl.CostEstimate(
        flops=4 * M * E * H,                               # two matmuls, 2*M*E*H each
        transcendentals=M * H,
        bytes_accessed=(Mp * Ep * (x_bytes + out_bytes)
                        + weight_fetches * ((w1p.size + w2p.size) * cd_bytes
                                            + (b1p.size + b2p.size) * 4)),
    )

    if resident_tm is not None:
        out2d = pl.pallas_call(
            _ffn_kernel_resident,
            out_shape=jax.ShapeDtypeStruct((Mp, Ep), x.dtype),
            grid_spec=pltpu.PrefetchScalarGridSpec(
                num_scalar_prefetch=0,
                grid=(n_row_tiles,),
                in_specs=[
                    pl.BlockSpec((tm_eff, Ep), lambda i: (i, 0)),   # x rows
                    pl.BlockSpec((Ep, Hp), lambda i: (0, 0)),       # W1 (resident, one DMA)
                    pl.BlockSpec((1, Hp), lambda i: (0, 0)),        # b1
                    pl.BlockSpec((Hp, Ep), lambda i: (0, 0)),       # W2 (resident, one DMA)
                    pl.BlockSpec((1, Ep), lambda i: (0, 0)),        # b2
                ],
                out_specs=pl.BlockSpec((tm_eff, Ep), lambda i: (i, 0)),
            ),
            compiler_params=pltpu.CompilerParams(
                dimension_semantics=("parallel",),
                vmem_limit_bytes=vmem_limit,
            ),
            cost_estimate=cost,
        )(x2d, w1p, b1p, w2p, b2p)
    else:
        out2d = pl.pallas_call(
            _ffn_kernel_streamed,
            out_shape=jax.ShapeDtypeStruct((Mp, Ep), x.dtype),
            grid_spec=pltpu.PrefetchScalarGridSpec(
                num_scalar_prefetch=0,
                grid=(n_row_tiles, Hp // th),               # (row tiles, H reduction tiles)
                in_specs=[
                    pl.BlockSpec((tm_eff, Ep), lambda i, h: (i, 0)),  # x rows (const over h)
                    pl.BlockSpec((Ep, th), lambda i, h: (0, h)),      # W1 column block
                    pl.BlockSpec((1, th), lambda i, h: (0, h)),       # b1 slice
                    pl.BlockSpec((th, Ep), lambda i, h: (h, 0)),      # W2 row block
                    pl.BlockSpec((1, Ep), lambda i, h: (0, 0)),       # b2
                ],
                out_specs=pl.BlockSpec((tm_eff, Ep), lambda i, h: (i, 0)),
                scratch_shapes=[pltpu.VMEM((tm_eff, Ep), jnp.float32)],
            ),
            compiler_params=pltpu.CompilerParams(
                dimension_semantics=("parallel", "arbitrary"),
                vmem_limit_bytes=vmem_limit,
            ),
            cost_estimate=cost,
        )(x2d, w1p, b1p, w2p, b2p)

    return out2d[:M, :E].reshape(B, S, E)


def _reference(x, w1, b1, w2, b2):
    h = x @ w1 + b1
    return _gelu_tanh(h) @ w2 + b2


if __name__ == "__main__":
    key = jax.random.PRNGKey(0)

    def run_case(B, S, E, **ffn_kwargs):
        H = 4 * E
        case_key = jax.random.fold_in(key, 1000 * E + 10 * S + B)
        k_x, k_w1, k_b1, k_w2, k_b2 = jax.random.split(case_key, 5)

        x = jax.random.normal(k_x, (B, S, E), dtype=jnp.float32)

        # Deterministic nn.Linear-style init: U(-1/sqrt(fan_in), 1/sqrt(fan_in))
        bound1 = 1.0 / math.sqrt(E)
        w1 = jax.random.uniform(k_w1, (E, H), jnp.float32, -bound1, bound1)
        b1 = jax.random.uniform(k_b1, (H,), jnp.float32, -bound1, bound1)
        bound2 = 1.0 / math.sqrt(H)
        w2 = jax.random.uniform(k_w2, (H, E), jnp.float32, -bound2, bound2)
        b2 = jax.random.uniform(k_b2, (E,), jnp.float32, -bound2, bound2)

        params = prepare_ffn_weights(w1, b1, w2, b2)          # once, at "model init"
        out = jax.block_until_ready(feed_forward(x, params, **ffn_kwargs))
        ref = _reference(x, w1, b1, w2, b2)
        assert out.shape == (B, S, E)
        # bf16 matmul operands (f32 accumulation) -> loosened tolerance vs f32 reference.
        assert jnp.allclose(out, ref, atol=2e-2, rtol=2e-2), f"mismatch (B={B},S={S},E={E})"

    run_case(2, 8, 32)                                        # resident-weights fast path
    run_case(2, 10, 32)                                       # ragged batch*seq -> M padding path
    run_case(2, 8, 64, _force_streamed=True, _max_th=128)     # streamed-H path, 2 reduction steps
    print("KERNEL_OK")
</pallas_src>

<mosaic_0001>
module attributes {stable_mosaic.version = 11 : i64} {
  func.func @_ffn_kernel_resident(%arg0: i32, %arg1: memref<16x128xf32, #tpu.memory_space<vmem>>, %arg2: memref<128x128xbf16, #tpu.memory_space<vmem>>, %arg3: memref<1x128xf32, #tpu.memory_space<vmem>>, %arg4: memref<128x128xbf16, #tpu.memory_space<vmem>>, %arg5: memref<1x128xf32, #tpu.memory_space<vmem>>, %arg6: memref<16x128xf32, #tpu.memory_space<vmem>>) attributes {dimension_semantics = [#tpu.dimension_semantics<parallel>], iteration_bounds = array<i64: 1>, scalar_prefetch = 0 : i64, scratch_operands = 0 : i64, tpu.core_type = #tpu.core_type<tc>, window_params = [{transform_indices = @transform_0, window_bounds = array<i64: 16, 128>}, {pipeline_mode = #tpu.pipeline_mode<synchronous>, transform_indices = @transform_1, window_bounds = array<i64: 128, 128>}, {pipeline_mode = #tpu.pipeline_mode<synchronous>, transform_indices = @transform_2, window_bounds = array<i64: 1, 128>}, {pipeline_mode = #tpu.pipeline_mode<synchronous>, transform_indices = @transform_3, window_bounds = array<i64: 128, 128>}, {pipeline_mode = #tpu.pipeline_mode<synchronous>, transform_indices = @transform_4, window_bounds = array<i64: 1, 128>}, {transform_indices = @transform_5, window_bounds = array<i64: 16, 128>}]} {
    %c0 = arith.constant 0 : index
    %c0_0 = arith.constant 0 : index
    %0 = vector.load %arg1[%c0, %c0_0] : memref<16x128xf32, #tpu.memory_space<vmem>>, vector<16x128xf32>
    %1 = arith.truncf %0 : vector<16x128xf32> to vector<16x128xbf16>
    %c0_1 = arith.constant 0 : index
    %c0_2 = arith.constant 0 : index
    %2 = vector.load %arg2[%c0_1, %c0_2] : memref<128x128xbf16, #tpu.memory_space<vmem>>, vector<128x128xbf16>
    %cst = arith.constant dense<0.000000e+00> : vector<16x128xf32>
    %3 = tpu.matmul %1, %2, %cst {dimension_numbers = #tpu.dot_dimension_numbers<[1], [0], [0], [1], [0, 0, 1, 1], [], []>} : vector<16x128xbf16>, vector<128x128xbf16>, vector<16x128xf32> -> vector<16x128xf32>
    %c0_3 = arith.constant 0 : index
    %c0_4 = arith.constant 0 : index
    %4 = vector.load %arg3[%c0_3, %c0_4] : memref<1x128xf32, #tpu.memory_space<vmem>>, vector<1x128xf32>
    %5 = vector.broadcast %4 : vector<1x128xf32> to vector<16x128xf32>
    %6 = arith.addf %3, %5 : vector<16x128xf32>
    %cst_5 = arith.constant 5.000000e-01 : f32
    %7 = vector.broadcast %cst_5 : f32 to vector<16x128xf32>
    %8 = arith.mulf %7, %6 : vector<16x128xf32>
    %9 = arith.mulf %6, %6 : vector<16x128xf32>
    %10 = arith.mulf %9, %6 : vector<16x128xf32>
    %cst_6 = arith.constant 4.471500e-02 : f32
    %11 = vector.broadcast %cst_6 : f32 to vector<16x128xf32>
    %12 = arith.mulf %11, %10 : vector<16x128xf32>
    %13 = arith.addf %6, %12 : vector<16x128xf32>
    %cst_7 = arith.constant 0.797884583 : f32
    %14 = vector.broadcast %cst_7 : f32 to vector<16x128xf32>
    %15 = arith.mulf %14, %13 : vector<16x128xf32>
    %16 = math.tanh %15 : vector<16x128xf32>
    %cst_8 = arith.constant 1.000000e+00 : f32
    %17 = vector.broadcast %cst_8 : f32 to vector<16x128xf32>
    %18 = arith.addf %17, %16 : vector<16x128xf32>
    %19 = arith.mulf %8, %18 : vector<16x128xf32>
    %20 = arith.truncf %19 : vector<16x128xf32> to vector<16x128xbf16>
    %c0_9 = arith.constant 0 : index
    %c0_10 = arith.constant 0 : index
    %21 = vector.load %arg4[%c0_9, %c0_10] : memref<128x128xbf16, #tpu.memory_space<vmem>>, vector<128x128xbf16>
    %cst_11 = arith.constant dense<0.000000e+00> : vector<16x128xf32>
    %22 = tpu.matmul %20, %21, %cst_11 {dimension_numbers = #tpu.dot_dimension_numbers<[1], [0], [0], [1], [0, 0, 1, 1], [], []>} : vector<16x128xbf16>, vector<128x128xbf16>, vector<16x128xf32> -> vector<16x128xf32>
    %c0_12 = arith.constant 0 : index
    %c0_13 = arith.constant 0 : index
    %23 = vector.load %arg5[%c0_12, %c0_13] : memref<1x128xf32, #tpu.memory_space<vmem>>, vector<1x128xf32>
    %24 = vector.broadcast %23 : vector<1x128xf32> to vector<16x128xf32>
    %25 = arith.addf %22, %24 : vector<16x128xf32>
    %c0_14 = arith.constant 0 : index
    %c0_15 = arith.constant 0 : index
    %26 = vector.load %arg6[%c0_14, %c0_15] : memref<16x128xf32, #tpu.memory_space<vmem>>, vector<16x128xf32>
    tpu.vector_store %arg6[%c0_14, %c0_15], %25 {strides = array<i32>} : memref<16x128xf32, #tpu.memory_space<vmem>>, vector<16x128xf32>,
    return
  }
  func.func @transform_0(%arg0: i32) -> (i32, i32) {
    %c0_i32 = arith.constant 0 : i32
    %c0_i32_0 = arith.constant 0 : i32
    return %arg0, %c0_i32 : i32, i32
  }
  func.func @transform_1(%arg0: i32) -> (i32, i32) {
    %c0_i32 = arith.constant 0 : i32
    %c0_i32_0 = arith.constant 0 : i32
    %c0_i32_1 = arith.constant 0 : i32
    return %c0_i32, %c0_i32_0 : i32, i32
  }
  func.func @transform_2(%arg0: i32) -> (i32, i32) {
    %c0_i32 = arith.constant 0 : i32
    %c0_i32_0 = arith.constant 0 : i32
    %c0_i32_1 = arith.constant 0 : i32
    return %c0_i32, %c0_i32_0 : i32, i32
  }
  func.func @transform_3(%arg0: i32) -> (i32, i32) {
    %c0_i32 = arith.constant 0 : i32
    %c0_i32_0 = arith.constant 0 : i32
    %c0_i32_1 = arith.constant 0 : i32
    return %c0_i32, %c0_i32_0 : i32, i32
  }
  func.func @transform_4(%arg0: i32) -> (i32, i32) {
    %c0_i32 = arith.constant 0 : i32
    %c0_i32_0 = arith.constant 0 : i32
    %c0_i32_1 = arith.constant 0 : i32
    return %c0_i32, %c0_i32_0 : i32, i32
  }
  func.func @transform_5(%arg0: i32) -> (i32, i32) {
    %c0_i32 = arith.constant 0 : i32
    %c0_i32_0 = arith.constant 0 : i32
    return %arg0, %c0_i32 : i32, i32
  }
}

</mosaic_0001>

<bundles_post_ra>
// kernel: tpu_custom_call.1
= control target key start
LH: loop header
LB: loop body
LE: loop exit
PB: predicated region body
PF: predicated region fallthrough
CT: control target
= control target key end

     0   :  { %10 = vsyncpa [#allocation3], 0  ;;  %s585_s0 = inlined_call_operand.hbm [shape: f32[16,128], index: 0, kind: input, shape index: {}]   ;;  %s586_s1 = inlined_call_operand.hbm [shape: bf16[128,128], index: 1, kind: input, shape index: {}]   ;;  %s587_s2 = inlined_call_operand.vmem [shape: f32[1,128], index: 2, kind: input, shape index: {}]   ;;  %s588_s3 = inlined_call_operand.hbm [shape: bf16[128,128], index: 3, kind: input, shape index: {}]   ;;  %s589_s4 = inlined_call_operand.vmem [shape: f32[1,128], index: 4, kind: input, shape index: {}]   ;;  %s590_s5 = inlined_call_operand.hbm [shape: f32[16,128], index: 5, kind: output, shape index: {}]  }
   0x1   :  { %11 = vsyncpa [#allocation6], 0 }
   0x2   :  { %12 = vsyncpa [#allocation4], 0  ;;  %s521_s18 = smov [#allocation5]  }
   0x3   :  { %s30_s19 = sshll.u32 %s521_s18, 4  ;;  %s31_s19 = int_to_ptr.vmem [resolvable:$true] %s30_s19 }
   0x4   :  { %s443_s20 = scalar_lea.vmem %s31_s19, 1024  ;;  %p448_p1 = scmp.lt.s32.totalorder %s31_s19, %s31_s19 }
   0x5   :  { %p444_p0 = scmp.ne.s32.totalorder %s31_s19, %s443_s20  ;;  %p449_p2 = scmp.lt.s32.totalorder %s443_s20, %s443_s20 }
   0x7   :  { %p450_p3 = por %p449_p2, %p448_p1 }
   0x9   :  { %p451_p4 = pnand %p450_p3, %p444_p0 }
   0xb   :  { %454 = shalt.err (!%p451_p4)
}
   0xc   :  { %s522_s21 = smov 64   ;;  %s523_s22 = smov 4  }
   0xd   :  { %36 = dma.hbm_to_vmem [thread:$0]  %s586_s1, 1024, %s31_s19, [#allocation6], %s522_s21, %s522_s21, %s523_s22  }
   0xe   :  { %s524_s25 = smov [#allocation2]  }
   0xf   :  { %s18_s26 = sshll.u32 %s524_s25, 4  ;;  %s19_s26 = int_to_ptr.vmem [resolvable:$true] %s18_s26 }
  0x10   :  { %s463_s27 = scalar_lea.vmem %s19_s26, 256  ;;  %p468_p6 = scmp.lt.s32.totalorder %s19_s26, %s19_s26 }
  0x11   :  { %p464_p5 = scmp.ne.s32.totalorder %s19_s26, %s463_s27  ;;  %p469_p7 = scmp.lt.s32.totalorder %s463_s27, %s463_s27 }
  0x13   :  { %p470_p8 = por %p469_p7, %p468_p6 }
  0x15   :  { %p471_p9 = pnand %p470_p8, %p464_p5 }
  0x17   :  { %474 = shalt.err (!%p471_p9)
}
  0x18   :  { %s525_s28 = smov 128   ;;  %s526_s29 = smov 8  }
  0x19   :  { %24 = dma.hbm_to_vmem [thread:$0]  %s585_s0, 256, %s19_s26, [#allocation3], %s525_s28, %s525_s28, %s526_s29  }
  0x1a   :  { %s527_s1 = smov [#allocation7]  }
  0x1b   :  { %s44_s7 = sshll.u32 %s527_s1, 4  ;;  %s45_s7 = int_to_ptr.vmem [resolvable:$true] %s44_s7 }
  0x1c   :  { %s483_s8 = scalar_lea.vmem %s45_s7, 1024  ;;  %p488_p11 = scmp.lt.s32.totalorder %s45_s7, %s45_s7 }
  0x1d   :  { %p484_p10 = scmp.ne.s32.totalorder %s45_s7, %s483_s8  ;;  %p489_p12 = scmp.lt.s32.totalorder %s483_s8, %s483_s8 }
  0x1f   :  { %p490_p13 = por %p489_p12, %p488_p11 }
  0x21   :  { %p491_p0 = pnand %p490_p13, %p484_p10 }
  0x23   :  { %494 = shalt.err (!%p491_p0)
}
  0x24   :  { %50 = dma.hbm_to_vmem [thread:$0]  %s588_s3, 1024, %s45_s7, [#allocation6], %s522_s21, %s522_s21, %s523_s22  }
  0x25   :  { %515 = dma.done.wait [#allocation3], 256  }
  0x26   :  { %516 = vsyncadd [#allocation3], 4294967040 }
  0x27   :  { %517 = dma.done.wait [#allocation6], 2048  }
  0x28   :  { %518 = vsyncadd [#allocation6], 4294965248  ;;  %v528_v0 = vmov 0.0   ;;  %vm529_vm0 = vmmov 0   ;;  %v415_v1 = vld [vmem:[#allocation5 + $0x38] sm:$0xff]   ;;  %v416_v2 = vld [vmem:[#allocation5 + $0x30] sm:$0xff]  }
  0x29   :  { %365 = vmatprep.subr.bf16.mxu0 %v528_v0  ;;  %381 = vmatprep.mubr.msk.bf16.mxu0 %vm529_vm0, %v528_v0  ;;  %v417_v3 = vld [vmem:[#allocation5 + $0x28] sm:$0xff]   ;;  %v418_v4 = vld [vmem:[#allocation5 + $0x20] sm:$0xff]   ;;  %v419_v5 = vld [vmem:[#allocation5 + $0x18] sm:$0xff]   ;;  %s530_s12 = smov [#allocation8]  }
  0x2a   :  { %385 = vmatprep.subr.bf16.mxu1 %v528_v0  ;;  %401 = vmatprep.mubr.msk.bf16.mxu1 %vm529_vm0, %v528_v0  ;;  %v420_v6 = vld [vmem:[#allocation5 + $0x10] sm:$0xff]   ;;  %v421_v7 = vld [vmem:[#allocation5 + $0x8] sm:$0xff]   ;;  %v422_v8 = vld [vmem:[#allocation5] sm:$0xff]   ;;  %s316_s13 = sshll.u32 %s530_s12, 4  ;;  %s317_s13 = int_to_ptr.vmem [resolvable:$true] %s316_s13 }
  0x2b   :  { %366 = vmatpush3.bf16.msra.mxu0 %v415_v1  ;;  %v63_v9 = vld [vmem:[#allocation2] sm:$0xff]  ;;  %v64_v10 = vld [vmem:[#allocation2 + $0x8] sm:$0xff]  ;;  %v425_v14 = vld [vmem:[#allocation7 + $0x28] sm:$0xff]   ;;  %s495_s14 = scalar_lea.vmem %s317_s13, 256  ;;  %p500_p2 = scmp.lt.s32.totalorder %s317_s13, %s317_s13 }
  0x2c   :  { %367 = vmatprep.subr.bf16.mxu0 %v528_v0  ;;  %v65_v11 = vpack.c.bf16 %v64_v10, %v63_v9  ;;  %v423_v12 = vld [vmem:[#allocation7 + $0x38] sm:$0xff]   ;;  %v424_v13 = vld [vmem:[#allocation7 + $0x30] sm:$0xff]   ;;  %v426_v15 = vld [vmem:[#allocation7 + $0x20] sm:$0xff]   ;;  %p496_p1 = scmp.ne.s32.totalorder %s317_s13, %s495_s14  ;;  %p501_p3 = scmp.lt.s32.totalorder %s495_s14, %s495_s14 }
  0x2d   :  { %386 = vmatpush3.bf16.msra.mxu1 %v423_v12  ;;  %v427_v16 = vld [vmem:[#allocation7 + $0x18] sm:$0xff]   ;;  %v428_v17 = vld [vmem:[#allocation7 + $0x10] sm:$0xff]   ;;  %v429_v18 = vld [vmem:[#allocation7 + $0x8] sm:$0xff]  }
  0x2e   :  { %387 = vmatprep.subr.bf16.mxu1 %v528_v0  ;;  %v430_v19 = vld [vmem:[#allocation7] sm:$0xff]   ;;  %v329_v20 = vld [vmem:[%s587_s2] ss:$0 sm:$0xff]  ;;  %p502_p4 = por %p501_p3, %p500_p2 }
  0x2f   :  { %368 = vmatpush3.bf16.msra.mxu0 %v416_v2  ;;  %v338_v46 = vld [vmem:[%s589_s4] ss:$0 sm:$0xff] }
  0x30   :  { %369 = vmatprep.subr.bf16.mxu0 %v528_v0  ;;  %p503_p5 = pnand %p502_p4, %p496_p1 }
  0x31   :  { %388 = vmatpush3.bf16.msra.mxu1 %v424_v13 }
  0x32   :  { %389 = vmatprep.subr.bf16.mxu1 %v528_v0 }
  0x33   :  { %370 = vmatpush3.bf16.msra.mxu0 %v417_v3 }
  0x34   :  { %371 = vmatprep.subr.bf16.mxu0 %v528_v0 }
  0x35   :  { %390 = vmatpush3.bf16.msra.mxu1 %v425_v14 }
  0x36   :  { %391 = vmatprep.subr.bf16.mxu1 %v528_v0 }
  0x37   :  { %372 = vmatpush3.bf16.msra.mxu0 %v418_v4 }
  0x38   :  { %373 = vmatprep.subr.bf16.mxu0 %v528_v0 }
  0x39   :  { %392 = vmatpush3.bf16.msra.mxu1 %v426_v15 }
  0x3a   :  { %393 = vmatprep.subr.bf16.mxu1 %v528_v0 }
  0x3b   :  { %374 = vmatpush3.bf16.msra.mxu0 %v419_v5 }
  0x3c   :  { %375 = vmatprep.subr.bf16.mxu0 %v528_v0 }
  0x3d   :  { %394 = vmatpush3.bf16.msra.mxu1 %v427_v16 }
  0x3e   :  { %395 = vmatprep.subr.bf16.mxu1 %v528_v0 }
  0x3f   :  { %376 = vmatpush3.bf16.msra.mxu0 %v420_v6 }
  0x40   :  { %377 = vmatprep.subr.bf16.mxu0 %v528_v0 }
  0x41   :  { %396 = vmatpush3.bf16.msra.mxu1 %v428_v17 }
  0x42   :  { %397 = vmatprep.subr.bf16.mxu1 %v528_v0 }
  0x43   :  { %378 = vmatpush3.bf16.msra.mxu0 %v421_v7 }
  0x44   :  { %379 = vmatprep.subr.bf16.mxu0 %v528_v0 }
  0x45   :  { %398 = vmatpush3.bf16.msra.mxu1 %v429_v18 }
  0x46   :  { %399 = vmatprep.subr.bf16.mxu1 %v528_v0 }
  0x47   :  { %380 = vmatpush3.bf16.msra.mxu0 %v422_v8 }
  0x49   :  { %400 = vmatpush3.bf16.msra.mxu1 %v430_v19 }
  0x4a   :  { %382 = vmatmul.mubr.bf16.vlgmr.msra.gmra.mxu0 %v65_v11 }
 0x10a   :  { %v171_v21 = vpop.f32.mrf.mxu0 }
 0x10b   :  { %v172_v22 = vadd.f32 %v329_v20, %v171_v21 }
 0x10c   :  { %v383_v23 = vpop.f32.mrf.mxu0 }
 0x10d   :  { %v180_v24 = vmul.f32 %v172_v22, %v172_v22  ;;  %v178_v40 = vmul.f32 0.5, %v172_v22 }
 0x10e   :  { %v174_v25 = vpop.f32.mrf.mxu0 }
 0x10f   :  { %v182_v26 = vmul.f32 %v180_v24, %v172_v22  ;;  %v175_v27 = vadd.f32 %v329_v20, %v174_v25 }
 0x110   :  { %v384_v28 = vpop.f32.mrf.mxu0 }
 0x111   :  { %v184_v29 = vmul.f32 0.044715, %v182_v26  ;;  %v181_v30 = vmul.f32 %v175_v27, %v175_v27  ;;  %v179_v41 = vmul.f32 0.5, %v175_v27 }
 0x113   :  { %v186_v31 = vadd.f32 %v184_v29, %v172_v22  ;;  %v183_v32 = vmul.f32 %v181_v30, %v175_v27 }
 0x115   :  { %v188_v33 = vmul.f32 0.7978846, %v186_v31  ;;  %v185_v34 = vmul.f32 0.044715, %v183_v32 }
 0x117   :  { %431 = vtanh.f32 %v188_v33  ;;  %v187_v35 = vadd.f32 %v185_v34, %v175_v27 }
 0x119   :  { %v189_v36 = vmul.f32 0.7978846, %v187_v35 }
 0x11b   :  { %433 = vtanh.f32 %v189_v36 }
 0x124   :  { %v432_v37 = vpop.eup %431 }
 0x125   :  { %v192_v38 = vadd.f32 1.0, %v432_v37 }
 0x127   :  { %v194_v43 = vmul.f32 %v192_v38, %v178_v40 }
 0x128   :  { %v434_v39 = vpop.eup %433 }
 0x129   :  { %v193_v42 = vadd.f32 1.0, %v434_v39 }
 0x12b   :  { %v195_v44 = vmul.f32 %v193_v42, %v179_v41 }
 0x12d   :  { %v196_v45 = vpack.c.bf16 %v195_v44, %v194_v43 }
 0x12f   :  { %402 = vmatmul.mubr.bf16.vlgmr.msra.gmra.mxu1 %v196_v45 }
 0x1ef   :  { %v302_v47 = vpop.f32.mrf.mxu1 }
 0x1f0   :  { %v303_v48 = vadd.f32 %v338_v46, %v302_v47 }
 0x1f1   :  { %v403_v49 = vpop.f32.mrf.mxu1 }
 0x1f2   :  { %309 = vst [vmem:[#allocation8] sm:$0xff] %v303_v48 }
 0x1f3   :  { %v305_v50 = vpop.f32.mrf.mxu1 }
 0x1f4   :  { %v306_v51 = vadd.f32 %v338_v46, %v305_v50 }
 0x1f5   :  { %v404_v52 = vpop.f32.mrf.mxu1 }
 0x1f6   :  { %310 = vst [vmem:[#allocation8 + $0x8] sm:$0xff] %v306_v51 }
 0x1f7   :  { %506 = shalt.err (!%p503_p5)
}
 0x1f8   :  { %322 = dma.vmem_to_hbm [thread:$0]  %s317_s13, 256, %s590_s5, [#allocation4], %s525_s28, %s525_s28, %s526_s29  }
 0x1f9   :  { %519 = dma.done.wait [#allocation4], 256  }
 0x1fa   :  { %520 = vsyncadd [#allocation4], 4294967040 }
 0x1fb   :  { %326 = vsyncpa [#allocation3], 1 }
 0x1fc   :  { %327 = vsyncpa [#allocation6], 1 }
 0x1fd   :  { %328 = vsyncpa [#allocation4], 1 }

</bundles_post_ra>
